<compile_context>
chip_gen: v6e
topology: v6e:2x2x1
jax: 0.10.0
libtpu: 0.0.40
codegen_flags: <defaults>
</compile_context>

<pallas_src>
import functools

import jax
import jax.numpy as jnp
from jax import lax
from jax.experimental import pallas as pl
from jax.experimental.pallas import tpu as pltpu

BN_EPS = 1e-5


def _deconv_bn_relu_kernel(cols_ref, w_ref, gamma_ref, beta_ref, o_ref, *,
                           n_phases, c_out):
    """cols_ref: (Mp, K_tot) bf16      w_ref: (P*Cout, K_tot) bf16
    gamma_ref / beta_ref: (Cout, 1) f32     o_ref: (P*Cout, Mp) f32."""
    mp = o_ref.shape[1]
    inv_count = 1.0 / float(n_phases * mp)

    # ---- pass 1: one block-diagonal MXU GEMM, contraction on the minor dims
    # (NT dimension numbers), f32 accumulation, lane-dense output.
    y = lax.dot_general(
        w_ref[...], cols_ref[...],
        dimension_numbers=(((1,), (1,)), ((), ())),
        preferred_element_type=jnp.float32)                     # (P*Cout, Mp)
    o_ref[...] = y                                              # stash result

    # Per-(phase, channel) row sums, fold phases -> per-channel mean.
    s1 = jnp.sum(y, axis=-1, keepdims=True)                     # (P*Cout, 1)
    tot = s1[:c_out]
    for ph in range(1, n_phases):
        tot = tot + s1[ph * c_out:(ph + 1) * c_out]
    mean = tot * inv_count                                      # (Cout, 1)
    mean_pc = jnp.concatenate([mean] * n_phases, axis=0)        # (P*Cout, 1)

    # ---- pass 2: centered (two-pass) variance -> numerically robust.
    yc = o_ref[...] - mean_pc
    s2 = jnp.sum(yc * yc, axis=-1, keepdims=True)               # (P*Cout, 1)
    tot_sq = s2[:c_out]
    for ph in range(1, n_phases):
        tot_sq = tot_sq + s2[ph * c_out:(ph + 1) * c_out]
    var = jnp.maximum(tot_sq * inv_count, 0.0)                  # (Cout, 1)

    scale = gamma_ref[...] * lax.rsqrt(var + BN_EPS)            # (Cout, 1)
    shift = beta_ref[...] - mean * scale
    scale_pc = jnp.concatenate([scale] * n_phases, axis=0)      # (P*Cout, 1)
    shift_pc = jnp.concatenate([shift] * n_phases, axis=0)

    # ---- pass 3: BN affine + ReLU, one hoisted broadcast, one store.
    o_ref[...] = jnp.maximum(o_ref[...] * scale_pc + shift_pc, 0.0)


def _phase_taps(K, s, p, r):
    """Taps of output phase r (oh = s*oh2 + r): kernel index kh with
    (r + p - kh) % s == 0 reads input row ih = oh2 + d, d = (r + p - kh)//s."""
    taps = []
    for kh in range(K):
        if (r + p - kh) % s == 0:
            taps.append((kh, (r + p - kh) // s))
    return taps


def deconv_bn_relu(x, w_t, bias, gamma, beta, *, stride, padding, output_padding):
    """x: (N, Cin, H, W).  w_t: (Cin, Cout, KH, KW) (ConvTranspose2d layout).
    Returns ReLU(BatchNorm2d(ConvTranspose2d(x))) with train-mode batch stats."""
    N, Cin, H, W = x.shape
    _, Cout, KH, KW = w_t.shape
    s, p, op = stride, padding, output_padding
    Ho = (H - 1) * s - 2 * p + KH + op
    Wo = (W - 1) * s - 2 * p + KW + op
    # TODO(synk): padding/output_padding combos where s does not divide Ho/Wo
    # would need a ragged last phase; not handled by the sub-pixel path.
    assert Ho % s == 0 and Wo % s == 0
    Ho2, Wo2 = Ho // s, Wo // s
    M_ph = N * Ho2 * Wo2
    P = s * s

    # -------- trace-time glue: per-phase taps + Cin-minor im2col --------
    taps_h = [_phase_taps(KH, s, p, r) for r in range(s)]
    taps_w = [_phase_taps(KW, s, p, r) for r in range(s)]

    dhs = [d for t in taps_h for (_, d) in t] or [0]
    dws = [d for t in taps_w for (_, d) in t] or [0]
    pad_t = max(0, -min(dhs))
    pad_b = max(0, max(dhs) + Ho2 - H)
    pad_l = max(0, -min(dws))
    pad_r = max(0, max(dws) + Wo2 - W)

    x_nhwc = jnp.transpose(x, (0, 2, 3, 1))                        # (N,H,W,Cin)
    x_pad = jnp.pad(x_nhwc, ((0, 0), (pad_t, pad_b), (pad_l, pad_r), (0, 0)))

    # Tap slices are (N, Ho2, Wo2, Cin) with Cin already minor -> no per-tap
    # transposes; one minor-dim concat + one reshape builds the cols slab.
    col_blocks = []                     # flat, phase-major order
    w_blocks = []                       # per phase: (Cout, Kc_ph)
    for rh in range(s):
        th = taps_h[rh] or [(None, 0)]  # zero-tap phase -> dummy, zero weight
        for rw in range(s):
            tw = taps_w[rw] or [(None, 0)]
            wb = []
            for kh, dh in th:
                for kw, dw in tw:
                    col_blocks.append(
                        x_pad[:, dh + pad_t:dh + pad_t + Ho2,
                              dw + pad_l:dw + pad_l + Wo2, :])
                    if kh is None or kw is None:
                        wb.append(jnp.zeros((Cout, Cin), w_t.dtype))
                    else:
                        wb.append(jnp.transpose(w_t[:, :, kh, kw]))   # (Cout,Cin)
            w_blocks.append(jnp.concatenate(wb, axis=1))              # (Cout,Kc)

    cols = jnp.concatenate(col_blocks, axis=-1).reshape(M_ph, -1)     # (Mp,Ktot)
    K_tot = cols.shape[1]

    # Block-diagonal weight: phase ph occupies rows [ph*Cout, (ph+1)*Cout) and
    # its own K-column range, so ONE MXU matmul covers every phase.
    w_blk = jnp.zeros((P * Cout, K_tot), jnp.float32)
    off = 0
    for ph, wb in enumerate(w_blocks):
        kc = wb.shape[1]
        w_blk = w_blk.at[ph * Cout:(ph + 1) * Cout, off:off + kc].set(wb)
        off += kc

    # bf16 MXU operands (≈3x MXU throughput, half the cols DMA); accumulation
    # and BN math stay f32 inside the kernel (v5e VPU/EUP have no bf16).
    cols = cols.astype(jnp.bfloat16)
    w_blk = w_blk.astype(jnp.bfloat16)

    gamma2 = gamma.reshape(Cout, 1).astype(jnp.float32)
    beta2 = beta.reshape(Cout, 1).astype(jnp.float32)
    # Conv bias is cancelled exactly by train-mode BN's mean subtraction.
    # (Would NOT hold for eval-mode BN with running statistics.)
    del bias

    # Gridless single-invocation budget vs the smallest scoped-VMEM default.
    out_bytes = P * Cout * M_ph * 4
    need = 2 * (cols.size * 2 + w_blk.size * 2 + out_bytes)
    assert need < 16 * 1024 * 1024, (
        "too large for the gridless path; use an M-tiled grid + two-phase BN")

    out2d = pl.pallas_call(
        functools.partial(_deconv_bn_relu_kernel, n_phases=P, c_out=Cout),
        out_shape=jax.ShapeDtypeStruct((P * Cout, M_ph), jnp.float32),
        compiler_params=pltpu.CompilerParams(
            vmem_limit_bytes=16 * 1024 * 1024),
    )(cols, w_blk, gamma2, beta2)

    # Phase-blocked (P*Cout, Mp) -> NCHW (module contract).  If a downstream
    # consumer accepts the phase-blocked / NHWC layout, this second HBM pass
    # over the output can be dropped.
    out = out2d.reshape(s, s, Cout, N, Ho2, Wo2)
    out = jnp.transpose(out, (3, 2, 4, 0, 5, 1)).reshape(N, Cout, Ho, Wo)
    return out


def ref_forward(x, w_t, bias, gamma, beta, *, stride, padding, output_padding):
    """Pure-JAX f32 reference of the same forward pass."""
    s, p, op = stride, padding, output_padding
    Cin, Cout, KH, KW = w_t.shape
    w_conv = jnp.transpose(w_t[:, :, ::-1, ::-1], (1, 0, 2, 3))   # (Cout,Cin,KH,KW)
    dn = lax.conv_dimension_numbers(x.shape, w_conv.shape, ('NCHW', 'OIHW', 'NCHW'))
    y = lax.conv_general_dilated(
        x, w_conv, window_strides=(1, 1),
        padding=[(KH - 1 - p, KH - 1 - p + op), (KW - 1 - p, KW - 1 - p + op)],
        lhs_dilation=(s, s), rhs_dilation=(1, 1), dimension_numbers=dn)
    y = y + bias.reshape(1, -1, 1, 1)
    mean = jnp.mean(y, axis=(0, 2, 3), keepdims=True)
    var = jnp.mean((y - mean) ** 2, axis=(0, 2, 3), keepdims=True)
    y = (y - mean) * lax.rsqrt(var + BN_EPS)
    y = y * gamma.reshape(1, -1, 1, 1) + beta.reshape(1, -1, 1, 1)
    return jnp.maximum(y, 0.0)


if __name__ == "__main__":
    key = jax.random.PRNGKey(0)
    kx, kw = jax.random.split(key)

    # DeConvReLU(in_channels=4, out_channels=8, kernel_size=4, stride=2,
    #            padding=1, output_padding=0)
    N, Cin, H, W = 2, 4, 16, 16
    Cout, K, s, p, op = 8, 4, 2, 1, 0

    x = jax.random.normal(kx, (N, Cin, H, W), dtype=jnp.float32)

    # xavier_normal_ init of the ConvTranspose2d weight (Cin, Cout, K, K):
    # PyTorch fan_in = Cout*K*K, fan_out = Cin*K*K, gain = 1.
    fan_in, fan_out = Cout * K * K, Cin * K * K
    std = (2.0 / (fan_in + fan_out)) ** 0.5
    w_t = std * jax.random.normal(kw, (Cin, Cout, K, K), dtype=jnp.float32)
    bias = jnp.zeros((Cout,), jnp.float32)       # nn.init.constant_(bias, 0)
    gamma = jnp.ones((Cout,), jnp.float32)       # BatchNorm2d weight default
    beta = jnp.zeros((Cout,), jnp.float32)       # BatchNorm2d bias default

    out = deconv_bn_relu(x, w_t, bias, gamma, beta,
                         stride=s, padding=p, output_padding=op)
    out = jax.block_until_ready(out)

    ref = ref_forward(x, w_t, bias, gamma, beta,
                      stride=s, padding=p, output_padding=op)

    assert out.shape == (N, Cout, (H - 1) * s - 2 * p + K + op,
                         (W - 1) * s - 2 * p + K + op)
    # bf16 MXU operands: agreement with the f32 reference to ~1e-2 absolute
    # post-BN (bf16 operand rounding amplified by the 1/std normalization);
    # the f32-operand variant of this kernel agrees to ~1e-6.
    max_err = float(jnp.max(jnp.abs(out - ref)))
    assert bool(jnp.allclose(out, ref, atol=5e-2, rtol=5e-2)), max_err
    print("KERNEL_OK")
</pallas_src>

<mosaic_0001>
module attributes {stable_mosaic.version = 11 : i64} {
  func.func @_deconv_bn_relu_kernel(%arg0: memref<512x64xbf16, #tpu.memory_space<vmem>>, %arg1: memref<32x64xbf16, #tpu.memory_space<vmem>>, %arg2: memref<8x1xf32, #tpu.memory_space<vmem>>, %arg3: memref<8x1xf32, #tpu.memory_space<vmem>>, %arg4: memref<32x512xf32, #tpu.memory_space<vmem>>) attributes {dimension_semantics = [], scalar_prefetch = 0 : i64, scratch_operands = 0 : i64, tpu.core_type = #tpu.core_type<tc>} {
    %c0 = arith.constant 0 : index
    %c0_0 = arith.constant 0 : index
    %0 = vector.load %arg1[%c0, %c0_0] : memref<32x64xbf16, #tpu.memory_space<vmem>>, vector<32x64xbf16>
    %c0_1 = arith.constant 0 : index
    %c0_2 = arith.constant 0 : index
    %1 = vector.load %arg0[%c0_1, %c0_2] : memref<512x64xbf16, #tpu.memory_space<vmem>>, vector<512x64xbf16>
    %cst = arith.constant dense<0.000000e+00> : vector<32x512xf32>
    %2 = tpu.matmul %0, %1, %cst {dimension_numbers = #tpu.dot_dimension_numbers<[1], [1], [0], [0], [0, 0, 1, 0], [], []>} : vector<32x64xbf16>, vector<512x64xbf16>, vector<32x512xf32> -> vector<32x512xf32>
    %c0_3 = arith.constant 0 : index
    %c0_4 = arith.constant 0 : index
    %3 = vector.load %arg4[%c0_3, %c0_4] : memref<32x512xf32, #tpu.memory_space<vmem>>, vector<32x512xf32>
    tpu.vector_store %arg4[%c0_3, %c0_4], %2 {strides = array<i32>} : memref<32x512xf32, #tpu.memory_space<vmem>>, vector<32x512xf32>,
    %cst_5 = arith.constant dense<0.000000e+00> : vector<32xf32>
    %4 = vector.multi_reduction <add>, %2, %cst_5 [1] : vector<32x512xf32> to vector<32xf32>
    %5 = vector.shape_cast %4 : vector<32xf32> to vector<32x1xf32>
    %6 = vector.extract_strided_slice %5 {offsets = [0, 0], sizes = [8, 1], strides = [1, 1]} : vector<32x1xf32> to vector<8x1xf32>
    %7 = vector.extract_strided_slice %5 {offsets = [8, 0], sizes = [8, 1], strides = [1, 1]} : vector<32x1xf32> to vector<8x1xf32>
    %8 = arith.addf %6, %7 : vector<8x1xf32>
    %9 = vector.extract_strided_slice %5 {offsets = [16, 0], sizes = [8, 1], strides = [1, 1]} : vector<32x1xf32> to vector<8x1xf32>
    %10 = arith.addf %8, %9 : vector<8x1xf32>
    %11 = vector.extract_strided_slice %5 {offsets = [24, 0], sizes = [8, 1], strides = [1, 1]} : vector<32x1xf32> to vector<8x1xf32>
    %12 = arith.addf %10, %11 : vector<8x1xf32>
    %cst_6 = arith.constant 4.8828125E-4 : f32
    %13 = vector.broadcast %cst_6 : f32 to vector<8x1xf32>
    %14 = arith.mulf %12, %13 : vector<8x1xf32>
    %15 = tpu.concatenate %14, %14, %14, %14 in 0 : vector<8x1xf32>, vector<8x1xf32>, vector<8x1xf32>, vector<8x1xf32> -> vector<32x1xf32>
    %c0_7 = arith.constant 0 : index
    %c0_8 = arith.constant 0 : index
    %16 = vector.load %arg4[%c0_7, %c0_8] : memref<32x512xf32, #tpu.memory_space<vmem>>, vector<32x512xf32>
    %17 = vector.broadcast %15 : vector<32x1xf32> to vector<32x512xf32>
    %18 = arith.subf %16, %17 : vector<32x512xf32>
    %19 = arith.mulf %18, %18 : vector<32x512xf32>
    %cst_9 = arith.constant dense<0.000000e+00> : vector<32xf32>
    %20 = vector.multi_reduction <add>, %19, %cst_9 [1] : vector<32x512xf32> to vector<32xf32>
    %21 = vector.shape_cast %20 : vector<32xf32> to vector<32x1xf32>
    %22 = vector.extract_strided_slice %21 {offsets = [0, 0], sizes = [8, 1], strides = [1, 1]} : vector<32x1xf32> to vector<8x1xf32>
    %23 = vector.extract_strided_slice %21 {offsets = [8, 0], sizes = [8, 1], strides = [1, 1]} : vector<32x1xf32> to vector<8x1xf32>
    %24 = arith.addf %22, %23 : vector<8x1xf32>
    %25 = vector.extract_strided_slice %21 {offsets = [16, 0], sizes = [8, 1], strides = [1, 1]} : vector<32x1xf32> to vector<8x1xf32>
    %26 = arith.addf %24, %25 : vector<8x1xf32>
    %27 = vector.extract_strided_slice %21 {offsets = [24, 0], sizes = [8, 1], strides = [1, 1]} : vector<32x1xf32> to vector<8x1xf32>
    %28 = arith.addf %26, %27 : vector<8x1xf32>
    %cst_10 = arith.constant 4.8828125E-4 : f32
    %29 = vector.broadcast %cst_10 : f32 to vector<8x1xf32>
    %30 = arith.mulf %28, %29 : vector<8x1xf32>
    %cst_11 = arith.constant 0.000000e+00 : f32
    %31 = vector.broadcast %cst_11 : f32 to vector<8x1xf32>
    %32 = arith.maximumf %30, %31 : vector<8x1xf32>
    %c0_12 = arith.constant 0 : index
    %c0_13 = arith.constant 0 : index
    %33 = vector.load %arg2[%c0_12, %c0_13] : memref<8x1xf32, #tpu.memory_space<vmem>>, vector<8x1xf32>
    %cst_14 = arith.constant 9.99999974E-6 : f32
    %34 = vector.broadcast %cst_14 : f32 to vector<8x1xf32>
    %35 = arith.addf %32, %34 : vector<8x1xf32>
    %36 = math.rsqrt %35 : vector<8x1xf32>
    %37 = arith.mulf %33, %36 : vector<8x1xf32>
    %c0_15 = arith.constant 0 : index
    %c0_16 = arith.constant 0 : index
    %38 = vector.load %arg3[%c0_15, %c0_16] : memref<8x1xf32, #tpu.memory_space<vmem>>, vector<8x1xf32>
    %39 = arith.mulf %14, %37 : vector<8x1xf32>
    %40 = arith.subf %38, %39 : vector<8x1xf32>
    %41 = tpu.concatenate %37, %37, %37, %37 in 0 : vector<8x1xf32>, vector<8x1xf32>, vector<8x1xf32>, vector<8x1xf32> -> vector<32x1xf32>
    %42 = tpu.concatenate %40, %40, %40, %40 in 0 : vector<8x1xf32>, vector<8x1xf32>, vector<8x1xf32>, vector<8x1xf32> -> vector<32x1xf32>
    %c0_17 = arith.constant 0 : index
    %c0_18 = arith.constant 0 : index
    %43 = vector.load %arg4[%c0_17, %c0_18] : memref<32x512xf32, #tpu.memory_space<vmem>>, vector<32x512xf32>
    %44 = vector.broadcast %41 : vector<32x1xf32> to vector<32x512xf32>
    %45 = arith.mulf %43, %44 : vector<32x512xf32>
    %46 = vector.broadcast %42 : vector<32x1xf32> to vector<32x512xf32>
    %47 = arith.addf %45, %46 : vector<32x512xf32>
    %cst_19 = arith.constant 0.000000e+00 : f32
    %48 = vector.broadcast %cst_19 : f32 to vector<32x512xf32>
    %49 = arith.maximumf %47, %48 : vector<32x512xf32>
    %c0_20 = arith.constant 0 : index
    %c0_21 = arith.constant 0 : index
    %50 = vector.load %arg4[%c0_20, %c0_21] : memref<32x512xf32, #tpu.memory_space<vmem>>, vector<32x512xf32>
    tpu.vector_store %arg4[%c0_20, %c0_21], %49 {strides = array<i32>} : memref<32x512xf32, #tpu.memory_space<vmem>>, vector<32x512xf32>,
    return
  }
}

</mosaic_0001>

<bundles_post_ra>
// kernel: tpu_custom_call.1
= control target key start
LH: loop header
LB: loop body
LE: loop exit
PB: predicated region body
PF: predicated region fallthrough
CT: control target
= control target key end

     0   :  { %vm257_vm0 = vcmask 523264   ;;  %s1103_s0 = inlined_call_operand.vmem [shape: bf16[512,64], index: 0, kind: input, shape index: {}]   ;;  %s1104_s1 = inlined_call_operand.vmem [shape: bf16[32,64], index: 1, kind: input, shape index: {}]   ;;  %s1105_s2 = inlined_call_operand.vmem [shape: f32[8,1], index: 2, kind: input, shape index: {}]   ;;  %s1106_s3 = inlined_call_operand.vmem [shape: f32[8,1], index: 3, kind: input, shape index: {}]   ;;  %s1107_s4 = inlined_call_operand.hbm [shape: f32[32,512], index: 4, kind: output, shape index: {}]  }
   0x1   :  { %v781_v0 = vld [vmem:[%s1103_s0 + $0x78] sm:$0xff]   ;;  %v785_v5 = vld [vmem:[%s1103_s0 + $0x70] sm:$0xff]   ;;  %v789_v11 = vld [vmem:[%s1103_s0 + $0x68] sm:$0xff]  }
   0x2   :  { %v782_v1 = vld [vmem:[%s1103_s0 + $0xf8] sm:$0xff]   ;;  %759 = vmatprep.subr.msk.bf16.mxu0 %vm257_vm0, %v781_v0  ;;  %v786_v7 = vld [vmem:[%s1103_s0 + $0xf0] sm:$0xff]   ;;  %v790_v13 = vld [vmem:[%s1103_s0 + $0xe8] sm:$0xff]  }
   0x3   :  { %v783_v2 = vld [vmem:[%s1103_s0 + $0x38] sm:$0xff]   ;;  %767 = vmatprep.subr.msk.bf16.mxu1 %vm257_vm0, %v782_v1  ;;  %v787_v8 = vld [vmem:[%s1103_s0 + $0x30] sm:$0xff]   ;;  %v791_v14 = vld [vmem:[%s1103_s0 + $0x28] sm:$0xff]  }
   0x4   :  { %v784_v3 = vld [vmem:[%s1103_s0 + $0xb8] sm:$0xff]   ;;  %v286_v4 = vsel %vm257_vm0, %v783_v2, 0  ;;  %v788_v9 = vld [vmem:[%s1103_s0 + $0xb0] sm:$0xff]   ;;  %v283_v10 = vsel %vm257_vm0, %v787_v8, 0  ;;  %v792_v15 = vld [vmem:[%s1103_s0 + $0xa8] sm:$0xff]   ;;  %v280_v16 = vsel %vm257_vm0, %v791_v14, 0 }
   0x5   :  { %720 = vmatpush3.bf16.xpose.msra.mxu0 %v286_v4  ;;  %v334_v6 = vsel %vm257_vm0, %v784_v3, 0  ;;  %v331_v12 = vsel %vm257_vm0, %v788_v9, 0  ;;  %v793_v17 = vld [vmem:[%s1103_s0 + $0x60] sm:$0xff]   ;;  %v328_v18 = vsel %vm257_vm0, %v792_v15, 0  ;;  %v797_v23 = vld [vmem:[%s1103_s0 + $0x58] sm:$0xff]   ;;  %v801_v30 = vld [vmem:[%s1103_s0 + $0x50] sm:$0xff]  }
   0x6   :  { %740 = vmatpush3.bf16.xpose.msra.mxu1 %v334_v6  ;;  %760 = vmatprep.subr.msk.bf16.mxu0 %vm257_vm0, %v785_v5  ;;  %v794_v19 = vld [vmem:[%s1103_s0 + $0xe0] sm:$0xff]   ;;  %v798_v25 = vld [vmem:[%s1103_s0 + $0xd8] sm:$0xff]  }
   0x7   :  { %768 = vmatprep.subr.msk.bf16.mxu1 %vm257_vm0, %v786_v7  ;;  %v795_v20 = vld [vmem:[%s1103_s0 + $0x20] sm:$0xff]   ;;  %v799_v26 = vld [vmem:[%s1103_s0 + $0x18] sm:$0xff]  }
   0x8   :  { %v796_v21 = vld [vmem:[%s1103_s0 + $0xa0] sm:$0xff]   ;;  %v277_v22 = vsel %vm257_vm0, %v795_v20, 0  ;;  %v800_v27 = vld [vmem:[%s1103_s0 + $0x98] sm:$0xff]   ;;  %v274_v29 = vsel %vm257_vm0, %v799_v26, 0 }
   0x9   :  { %v325_v24 = vsel %vm257_vm0, %v796_v21, 0  ;;  %v813_v28 = vld [vmem:[%s1104_s1] sm:$0xff]  }
   0xa   :  { %735 = vmatprep.mubr.msk.bf16.mxu0 %vm257_vm0, %v813_v28  ;;  %755 = vmatprep.mubr.msk.bf16.mxu1 %vm257_vm0, %v813_v28 }
   0xd   :  { %722 = vmatpush3.bf16.xpose.msra.mxu0 %v283_v10 }
   0xe   :  { %742 = vmatpush3.bf16.xpose.msra.mxu1 %v331_v12  ;;  %761 = vmatprep.subr.msk.bf16.mxu0 %vm257_vm0, %v789_v11 }
   0xf   :  { %769 = vmatprep.subr.msk.bf16.mxu1 %vm257_vm0, %v790_v13 }
  0x15   :  { %724 = vmatpush3.bf16.xpose.msra.mxu0 %v280_v16 }
  0x16   :  { %744 = vmatpush3.bf16.xpose.msra.mxu1 %v328_v18  ;;  %762 = vmatprep.subr.msk.bf16.mxu0 %vm257_vm0, %v793_v17 }
  0x17   :  { %770 = vmatprep.subr.msk.bf16.mxu1 %vm257_vm0, %v794_v19 }
  0x1d   :  { %726 = vmatpush3.bf16.xpose.msra.mxu0 %v277_v22 }
  0x1e   :  { %746 = vmatpush3.bf16.xpose.msra.mxu1 %v325_v24  ;;  %763 = vmatprep.subr.msk.bf16.mxu0 %vm257_vm0, %v797_v23 }
  0x1f   :  { %771 = vmatprep.subr.msk.bf16.mxu1 %vm257_vm0, %v798_v25 }
  0x20   :  { %9 = vsyncpa [#allocation3], 0  ;;  %v322_v31 = vsel %vm257_vm0, %v800_v27, 0  ;;  %v802_v32 = vld [vmem:[%s1103_s0 + $0xd0] sm:$0xff]   ;;  %v805_v36 = vld [vmem:[%s1103_s0 + $0x48] sm:$0xff]   ;;  %v839_v14 = vmov 0  }
  0x21   :  { %v803_v33 = vld [vmem:[%s1103_s0 + $0x10] sm:$0xff]   ;;  %v806_v38 = vld [vmem:[%s1103_s0 + $0xc8] sm:$0xff]   ;;  %v809_v42 = vld [vmem:[%s1103_s0 + $0x40] sm:$0xff]   ;;  %779 = vset.pattern.permute.xlu0 %v839_v14  ;;  %780 = vset.pattern.permute.xlu1 %v839_v14 }
  0x22   :  { %v804_v34 = vld [vmem:[%s1103_s0 + $0x90] sm:$0xff]   ;;  %v271_v35 = vsel %vm257_vm0, %v803_v33, 0  ;;  %v807_v39 = vld [vmem:[%s1103_s0 + $0x8] sm:$0xff]   ;;  %v810_v44 = vld [vmem:[%s1103_s0 + $0xc0] sm:$0xff]  }
  0x23   :  { %v319_v37 = vsel %vm257_vm0, %v804_v34, 0  ;;  %v808_v40 = vld [vmem:[%s1103_s0 + $0x88] sm:$0xff]   ;;  %v268_v41 = vsel %vm257_vm0, %v807_v39, 0  ;;  %v811_v45 = vld [vmem:[%s1103_s0] sm:$0xff]  }
  0x24   :  { %v316_v43 = vsel %vm257_vm0, %v808_v40, 0  ;;  %v812_v46 = vld [vmem:[%s1103_s0 + $0x80] sm:$0xff]   ;;  %v265_v47 = vsel %vm257_vm0, %v811_v45, 0  ;;  %v814_v49 = vld [vmem:[%s1104_s1 + $0x8] sm:$0xff]  }
  0x25   :  { %728 = vmatpush3.bf16.xpose.msra.mxu0 %v274_v29  ;;  %v313_v48 = vsel %vm257_vm0, %v812_v46, 0 }
  0x26   :  { %748 = vmatpush3.bf16.xpose.msra.mxu1 %v322_v31  ;;  %764 = vmatprep.subr.msk.bf16.mxu0 %vm257_vm0, %v801_v30 }
  0x27   :  { %772 = vmatprep.subr.msk.bf16.mxu1 %vm257_vm0, %v802_v32 }
  0x2d   :  { %730 = vmatpush3.bf16.xpose.msra.mxu0 %v271_v35 }
  0x2e   :  { %750 = vmatpush3.bf16.xpose.msra.mxu1 %v319_v37  ;;  %765 = vmatprep.subr.msk.bf16.mxu0 %vm257_vm0, %v805_v36 }
  0x2f   :  { %773 = vmatprep.subr.msk.bf16.mxu1 %vm257_vm0, %v806_v38 }
  0x35   :  { %732 = vmatpush3.bf16.xpose.msra.mxu0 %v268_v41 }
  0x36   :  { %752 = vmatpush3.bf16.xpose.msra.mxu1 %v316_v43  ;;  %766 = vmatprep.subr.msk.bf16.mxu0 %vm257_vm0, %v809_v42 }
  0x37   :  { %774 = vmatprep.subr.msk.bf16.mxu1 %vm257_vm0, %v810_v44 }
  0x3d   :  { %734 = vmatpush3.bf16.xpose.msra.mxu0 %v265_v47 }
  0x3e   :  { %754 = vmatpush3.bf16.xpose.msra.mxu1 %v313_v48 }
  0x44   :  { %736 = vmatmul.mubr.msk.bf16.vlgmr.msra.gmra.mxu0 %vm257_vm0, %v813_v28 }
  0x45   :  { %756 = vmatmul.mubr.msk.bf16.vlgmr.msra.gmra.mxu1 %vm257_vm0, %v813_v28  ;;  %737 = vmatprep.mubr.msk.bf16.mxu0 %vm257_vm0, %v814_v49 }
  0x46   :  { %757 = vmatprep.mubr.msk.bf16.mxu1 %vm257_vm0, %v814_v49 }
  0x4c   :  { %738 = vmatmul.mubr.msk.bf16.gmra.mxu0 %vm257_vm0, %v814_v49 }
  0x4d   :  { %758 = vmatmul.mubr.msk.bf16.gmra.mxu1 %vm257_vm0, %v814_v49 }
 0x104   :  { %v1010_v50 = vpop.f32.mrf.mxu0 }
 0x105   :  { %v1012_v51 = vpop.f32.mrf.mxu1 }
 0x106   :  { %v1014_v52 = vpop.f32.mrf.mxu0 }
 0x107   :  { %v482_v53 = vadd.f32 %v1014_v52, %v1010_v50  ;;  %v1018_v54 = vpop.f32.mrf.mxu1 }
 0x108   :  { %v1020_v55 = vpop.f32.mrf.mxu0 }
 0x109   :  { %v1022_v56 = vpop.f32.mrf.mxu1  ;;  %v483_v57 = vadd.f32 %v482_v53, %v1012_v51 }
 0x10a   :  { %v1025_v58 = vpop.f32.mrf.mxu0 }
 0x10b   :  { %v487_v59 = vadd.f32 %v1025_v58, %v1020_v55  ;;  %v1029_v60 = vpop.f32.mrf.mxu1  ;;  %v484_v61 = vadd.f32 %v483_v57, %v1018_v54 }
 0x10c   :  { %v1032_v62 = vpop.f32.mrf.mxu0 }
 0x10d   :  { %v1034_v63 = vpop.f32.mrf.mxu1  ;;  %485 = vadd.xlane.f32.xlu0 %v484_v61  ;;  %v488_v0 = vadd.f32 %v487_v59, %v1022_v56 }
 0x10e   :  { %v1037_v1 = vpop.f32.mrf.mxu0 }
 0x10f   :  { %v492_v2 = vadd.f32 %v1037_v1, %v1032_v62  ;;  %v1041_v3 = vpop.f32.mrf.mxu1  ;;  %v489_v4 = vadd.f32 %v488_v0, %v1029_v60 }
 0x110   :  { %v1044_v5 = vpop.f32.mrf.mxu0 }
 0x111   :  { %490 = vadd.xlane.f32.xlu0 %v489_v4  ;;  %v493_v6 = vadd.f32 %v492_v2, %v1034_v63  ;;  %v1047_v7 = vpop.f32.mrf.mxu1 }
 0x112   :  { %v1049_v8 = vpop.f32.mrf.mxu0 }
 0x113   :  { %v497_v9 = vadd.f32 %v1049_v8, %v1044_v5  ;;  %v494_v10 = vadd.f32 %v493_v6, %v1041_v3  ;;  %v1055_v12 = vpop.f32.mrf.mxu1 }
 0x115   :  { %v498_v11 = vadd.f32 %v497_v9, %v1047_v7  ;;  %495 = vadd.xlane.f32.xlu1 %v494_v10 }
 0x117   :  { %v499_v13 = vadd.f32 %v498_v11, %v1055_v12 }
 0x119   :  { %500 = vadd.xlane.f32.xlu1 %v499_v13 }
 0x196   :  { %v486_v15 = vpop.xlane.xlu0 %485 }
 0x19a   :  { %v491_v16 = vpop.xlane.xlu0 %490 }
 0x19b   :  { %v502_v18 = vadd.f32 %v491_v16, %v486_v15 }
 0x19e   :  { %v496_v17 = vpop.xlane.xlu1 %495 }
 0x19f   :  { %v503_v19 = vadd.f32 %v502_v18, %v496_v17 }
 0x1a2   :  { %v501_v20 = vpop.xlane.xlu1 %500 }
 0x1a3   :  { %v504_v21 = vadd.f32 %v503_v19, %v501_v20 }
 0x1a5   :  { %v1058_v22 = vmul.f32 0.00048828125, %v504_v21 }
 0x1a7   :  { %524 = vperm.xlu0 %779, %v1058_v22  }
 0x222   :  { %v525_v23 = vpop.permute.xlu0 %524 }
 0x223   :  { %v527_v24 = vsub.f32 %v1010_v50, %v525_v23  ;;  %v528_v25 = vsub.f32 %v1014_v52, %v525_v23  ;;  %v529_v26 = vsub.f32 %v1012_v51, %v525_v23  ;;  %v530_v27 = vsub.f32 %v1018_v54, %v525_v23 }
 0x224   :  { %v531_v28 = vsub.f32 %v1020_v55, %v525_v23  ;;  %v532_v29 = vsub.f32 %v1025_v58, %v525_v23  ;;  %v533_v30 = vsub.f32 %v1022_v56, %v525_v23  ;;  %v534_v34 = vsub.f32 %v1029_v60, %v525_v23 }
 0x225   :  { %v543_v31 = vmul.f32 %v527_v24, %v527_v24  ;;  %v544_v32 = vmul.f32 %v528_v25, %v528_v25  ;;  %v545_v33 = vmul.f32 %v529_v26, %v529_v26  ;;  %v546_v37 = vmul.f32 %v530_v27, %v530_v27 }
 0x226   :  { %v547_v35 = vmul.f32 %v531_v28, %v531_v28  ;;  %v548_v36 = vmul.f32 %v532_v29, %v532_v29  ;;  %v535_v39 = vsub.f32 %v1032_v62, %v525_v23  ;;  %v536_v40 = vsub.f32 %v1037_v1, %v525_v23 }
 0x227   :  { %v559_v38 = vadd.f32 %v544_v32, %v543_v31  ;;  %v549_v41 = vmul.f32 %v533_v30, %v533_v30  ;;  %v539_v43 = vsub.f32 %v1044_v5, %v525_v23  ;;  %v540_v44 = vsub.f32 %v1049_v8, %v525_v23 }
 0x228   :  { %v564_v42 = vadd.f32 %v548_v36, %v547_v35  ;;  %v537_v46 = vsub.f32 %v1034_v63, %v525_v23  ;;  %v551_v47 = vmul.f32 %v535_v39, %v535_v39  ;;  %v552_v48 = vmul.f32 %v536_v40, %v536_v40 }
 0x229   :  { %v560_v45 = vadd.f32 %v559_v38, %v545_v33  ;;  %v555_v59 = vmul.f32 %v539_v43, %v539_v43  ;;  %v556_v61 = vmul.f32 %v540_v44, %v540_v44  ;;  %v550_v0 = vmul.f32 %v534_v34, %v534_v34  ;;  %v588_v34 = vld [vmem:[%s1106_s3] sm:$0xff] }
 0x22a   :  { %v565_v49 = vadd.f32 %v564_v42, %v549_v41  ;;  %v569_v57 = vadd.f32 %v552_v48, %v551_v47  ;;  %v538_v2 = vsub.f32 %v1041_v3, %v525_v23  ;;  %v553_v4 = vmul.f32 %v537_v46, %v537_v46 }
 0x22b   :  { %v561_v53 = vadd.f32 %v560_v45, %v546_v37  ;;  %v541_v6 = vsub.f32 %v1047_v7, %v525_v23  ;;  %v574_v11 = vadd.f32 %v556_v61, %v555_v59  ;;  %v542_v14 = vsub.f32 %v1055_v12, %v525_v23  ;;  %v584_v23 = vld [vmem:[%s1105_s2] sm:$0xff]  ;;  %s840_s2 = smov [#allocation2]  }
 0x22c   :  { %v566_v9 = vadd.f32 %v565_v49, %v550_v0  ;;  %v570_v10 = vadd.f32 %v569_v57, %v553_v4  ;;  %v554_v13 = vmul.f32 %v538_v2, %v538_v2  ;;  %s670_s3 = sshll.u32 %s840_s2, 4  ;;  %s671_s3 = int_to_ptr.vmem [resolvable:$true] %s670_s3 }
 0x22d   :  { %562 = vadd.xlane.f32.xlu1 %v561_v53  ;;  %v557_v15 = vmul.f32 %v541_v6, %v541_v6  ;;  %v558_v18 = vmul.f32 %v542_v14, %v542_v14  ;;  %s817_s7 = scalar_lea.vmem %s671_s3, 2048  ;;  %p822_p1 = scmp.lt.s32.totalorder %s671_s3, %s671_s3 }
 0x22e   :  { %v571_v16 = vadd.f32 %v570_v10, %v554_v13  ;;  %p818_p0 = scmp.ne.s32.totalorder %s671_s3, %s817_s7  ;;  %p823_p2 = scmp.lt.s32.totalorder %s817_s7, %s817_s7 }
 0x22f   :  { %v575_v17 = vadd.f32 %v574_v11, %v557_v15 }
 0x230   :  { %p824_p3 = por %p823_p2, %p822_p1 }
 0x231   :  { %567 = vadd.xlane.f32.xlu1 %v566_v9  ;;  %v576_v19 = vadd.f32 %v575_v17, %v558_v18 }
 0x232   :  { %p825_p4 = pnand %p824_p3, %p818_p0 }
 0x235   :  { %572 = vadd.xlane.f32.xlu1 %v571_v16 }
 0x239   :  { %577 = vadd.xlane.f32.xlu1 %v576_v19 }
 0x2b6   :  { %v563_v20 = vpop.xlane.xlu1 %562 }
 0x2ba   :  { %v568_v21 = vpop.xlane.xlu1 %567 }
 0x2bb   :  { %v579_v25 = vadd.f32 %v568_v21, %v563_v20 }
 0x2be   :  { %v573_v24 = vpop.xlane.xlu1 %572 }
 0x2bf   :  { %v580_v26 = vadd.f32 %v579_v25, %v573_v24 }
 0x2c2   :  { %v578_v27 = vpop.xlane.xlu1 %577 }
 0x2c3   :  { %v581_v28 = vadd.f32 %v580_v26, %v578_v27 }
 0x2c5   :  { %v582_v29 = vmul.f32 0.00048828125, %v581_v28 }
 0x2c7   :  { %v583_v30 = vmax.f32 %v582_v29, 0.0 }
 0x2c9   :  { %v585_v31 = vadd.f32 1e-05, %v583_v30 }
 0x2cb   :  { %815 = vrsqrt.f32 %v585_v31 }
 0x2d8   :  { %v816_v32 = vpop.eup %815 }
 0x2d9   :  { %v587_v33 = vmul.f32 %v816_v32, %v584_v23 }
 0x2db   :  { %593 = vperm.xlu1 %780, %v587_v33   ;;  %v589_v35 = vmul.f32 %v587_v33, %v1058_v22 }
 0x2dd   :  { %v590_v36 = vsub.f32 %v588_v34, %v589_v35 }
 0x2df   :  { %614 = vperm.xlu1 %780, %v590_v36  }
 0x356   :  { %v594_v37 = vpop.permute.xlu1 %593 }
 0x357   :  { %v596_v38 = vmul.f32 %v594_v37, %v1010_v50  ;;  %v597_v39 = vmul.f32 %v594_v37, %v1014_v52  ;;  %v598_v40 = vmul.f32 %v594_v37, %v1012_v51  ;;  %v599_v41 = vmul.f32 %v594_v37, %v1018_v54 }
 0x358   :  { %v600_v42 = vmul.f32 %v594_v37, %v1020_v55  ;;  %v601_v43 = vmul.f32 %v594_v37, %v1025_v58  ;;  %v602_v44 = vmul.f32 %v594_v37, %v1022_v56  ;;  %v603_v45 = vmul.f32 %v594_v37, %v1029_v60 }
 0x359   :  { %v604_v22 = vmul.f32 %v594_v37, %v1032_v62  ;;  %v605_v46 = vmul.f32 %v594_v37, %v1037_v1  ;;  %v606_v50 = vmul.f32 %v594_v37, %v1034_v63  ;;  %v607_v52 = vmul.f32 %v594_v37, %v1041_v3 }
 0x35a   :  { %v608_v51 = vmul.f32 %v594_v37, %v1044_v5  ;;  %v609_v54 = vmul.f32 %v594_v37, %v1049_v8  ;;  %v610_v55 = vmul.f32 %v594_v37, %v1047_v7  ;;  %v611_v58 = vmul.f32 %v594_v37, %v1055_v12  ;;  %v615_v47 = vpop.permute.xlu1 %614 }
 0x35b   :  { %v617_v56 = vadd.f32 %v615_v47, %v596_v38  ;;  %v618_v48 = vadd.f32 %v615_v47, %v597_v39  ;;  %v619_v60 = vadd.f32 %v615_v47, %v598_v40  ;;  %v620_v49 = vadd.f32 %v615_v47, %v599_v41 }
 0x35c   :  { %v621_v62 = vadd.f32 %v615_v47, %v600_v42  ;;  %v622_v53 = vadd.f32 %v615_v47, %v601_v43  ;;  %v623_v1 = vadd.f32 %v615_v47, %v602_v44  ;;  %v624_v57 = vadd.f32 %v615_v47, %v603_v45 }
 0x35d   :  { %v625_v63 = vadd.f32 %v615_v47, %v604_v22  ;;  %v626_v59 = vadd.f32 %v615_v47, %v605_v46  ;;  %v627_v3 = vadd.f32 %v615_v47, %v606_v50  ;;  %v628_v61 = vadd.f32 %v615_v47, %v607_v52 }
 0x35e   :  { %v629_v5 = vadd.f32 %v615_v47, %v608_v51  ;;  %v630_v0 = vadd.f32 %v615_v47, %v609_v54  ;;  %v631_v8 = vadd.f32 %v615_v47, %v610_v55  ;;  %v632_v2 = vadd.f32 %v615_v47, %v611_v58 }
 0x35f   :  { %v633_v7 = vmax.f32 %v617_v56, 0.0  ;;  %v634_v4 = vmax.f32 %v618_v48, 0.0  ;;  %v635_v12 = vmax.f32 %v619_v60, 0.0  ;;  %v636_v6 = vmax.f32 %v620_v49, 0.0 }
 0x360   :  { %v637_v9 = vmax.f32 %v621_v62, 0.0  ;;  %v638_v10 = vmax.f32 %v622_v53, 0.0  ;;  %v639_v11 = vmax.f32 %v623_v1, 0.0  ;;  %v640_v13 = vmax.f32 %v624_v57, 0.0 }
 0x361   :  { %v641_v14 = vmax.f32 %v625_v63, 0.0  ;;  %v642_v15 = vmax.f32 %v626_v59, 0.0  ;;  %v643_v16 = vmax.f32 %v627_v3, 0.0  ;;  %v644_v17 = vmax.f32 %v628_v61, 0.0  ;;  %649 = vst [vmem:[#allocation2] sm:$0xff] %v633_v7  ;;  %650 = vst [vmem:[#allocation2 + $0x8] sm:$0xff] %v634_v4 }
 0x362   :  { %651 = vst [vmem:[#allocation2 + $0x10] sm:$0xff] %v635_v12  ;;  %652 = vst [vmem:[#allocation2 + $0x18] sm:$0xff] %v636_v6  ;;  %v645_v18 = vmax.f32 %v629_v5, 0.0  ;;  %v646_v19 = vmax.f32 %v630_v0, 0.0  ;;  %v647_v20 = vmax.f32 %v631_v8, 0.0  ;;  %v648_v21 = vmax.f32 %v632_v2, 0.0 }
 0x363   :  { %653 = vst [vmem:[#allocation2 + $0x20] sm:$0xff] %v637_v9  ;;  %654 = vst [vmem:[#allocation2 + $0x28] sm:$0xff] %v638_v10 }
 0x364   :  { %655 = vst [vmem:[#allocation2 + $0x30] sm:$0xff] %v639_v11  ;;  %656 = vst [vmem:[#allocation2 + $0x38] sm:$0xff] %v640_v13 }
 0x365   :  { %657 = vst [vmem:[#allocation2 + $0x40] sm:$0xff] %v641_v14  ;;  %658 = vst [vmem:[#allocation2 + $0x48] sm:$0xff] %v642_v15 }
 0x366   :  { %659 = vst [vmem:[#allocation2 + $0x50] sm:$0xff] %v643_v16  ;;  %660 = vst [vmem:[#allocation2 + $0x58] sm:$0xff] %v644_v17 }
 0x367   :  { %661 = vst [vmem:[#allocation2 + $0x60] sm:$0xff] %v645_v18  ;;  %662 = vst [vmem:[#allocation2 + $0x68] sm:$0xff] %v646_v19 }
 0x368   :  { %663 = vst [vmem:[#allocation2 + $0x70] sm:$0xff] %v647_v20  ;;  %664 = vst [vmem:[#allocation2 + $0x78] sm:$0xff] %v648_v21 }
 0x369   :  { %828 = shalt.err (!%p825_p4)
}
 0x36a   :  { %s841_s8 = smov 512   ;;  %s842_s9 = smov 32  }
 0x36b   :  { %676 = dma.vmem_to_hbm [thread:$0]  %s671_s3, 2048, %s1107_s4, [#allocation3], %s841_s8, %s841_s8, %s842_s9  }
 0x36c   :  { %837 = dma.done.wait [#allocation3], 2048  }
 0x36d   :  { %838 = vsyncadd [#allocation3], 4294965248 }
 0x36e   :  { %680 = vsyncpa [#allocation3], 1 }

</bundles_post_ra>
